<compile_context>
chip_gen: v6e
topology: v6e:2x2x1
jax: 0.10.0
libtpu: 0.0.40
codegen_flags: <defaults>
</compile_context>

<pallas_src>
import jax
import jax.numpy as jnp
from jax import lax
from jax.experimental import pallas as pl
from jax.experimental.pallas import tpu as pltpu


def _lane_time_index(N, L):
    """(1, N) int32: within-batch time index of each flat lane (lanes = batch-major time)."""
    col = lax.broadcasted_iota(jnp.int32, (1, N), 1)
    if L & (L - 1) == 0:            # power-of-two sequence length -> cheap bitwise AND
        return col & (L - 1)
    return col % L


def make_temporal_block_kernel(K, dilation, L, TB, Cin, Cout):
    P = (K - 1) * dilation          # causal left-padding (== chomp size)
    N = TB * L                      # flat lane width: TB batches side by side

    def causal_conv(w_ref, src_pad_ref, t_in):
        """Dilated causal conv as K accumulating MXU matmuls over (C, N) tap slices.

        src_pad_ref: (C_in, P + N) zero-prefixed flat scratch (lanes = batch-major time).
        w_ref:       (K, C_out, C_in) tap weights.
        Tap k reads the static lane slice [k*dilation, k*dilation + N).  Lanes whose
        within-batch time t < s_k would read the previous batch's tail, so that tap's
        column-wise contribution is masked to zero AFTER the matmul (f32, v5e-safe).
        """
        acc = None
        for k in range(K):
            s_k = P - k * dilation
            tap = src_pad_ref[:, k * dilation: k * dilation + N]          # (C_in, N)
            contrib = jnp.dot(w_ref[k], tap, preferred_element_type=jnp.float32)
            if s_k > 0:
                contrib = jnp.where(t_in >= s_k, contrib, 0.0)
            acc = contrib if acc is None else acc + contrib
        return acc                                                         # (C_out, N) f32

    def kernel(x_ref, w1_ref, b1_ref, w2_ref, b2_ref, wd_ref, bd_ref,
               o_ref, xpad_s, hpad_s):
        # x_ref: (TB, Cin, L); o_ref: (Cout, N) lane-dense slab block.
        t_in = _lane_time_index(N, L)

        # --- stage x into the zero-prefixed flat VMEM scratch (Cin, P + N).
        #     Prefix lanes stay zero (causal padding); no host pad pass, no concat.
        if P > 0:
            xpad_s[:, :P] = jnp.zeros((Cin, P), dtype=xpad_s.dtype)
        for b in range(TB):          # TB small static (Cin, L) stores — no transpose op
            xpad_s[:, P + b * L: P + (b + 1) * L] = x_ref[b].astype(xpad_s.dtype)

        # --- conv1 -> bias -> relu (f32 epilogue).
        h1 = jnp.maximum(causal_conv(w1_ref, xpad_s, t_in) + b1_ref[...], 0.0)
        # TODO(synk): nn.Dropout is identity in eval mode; training-mode dropout not implemented.

        # --- conv2: write h1 into the second zero-prefixed scratch, same tap scheme.
        if P > 0:
            hpad_s[:, :P] = jnp.zeros((Cout, P), dtype=hpad_s.dtype)
        hpad_s[:, P:] = h1.astype(hpad_s.dtype)
        h2 = jnp.maximum(causal_conv(w2_ref, hpad_s, t_in) + b2_ref[...], 0.0)

        # --- downsample (1x1 conv) on the un-shifted window + residual + relu.
        res = jnp.dot(wd_ref[...], xpad_s[:, P:], preferred_element_type=jnp.float32)
        o_ref[...] = jnp.maximum(h2 + res + bd_ref[...], 0.0).astype(o_ref.dtype)

    return kernel


def temporal_block(x_ncl, w1, b1, w2, b2, wd, bd, dilation,
                   compute_dtype=jnp.float32, out_dtype=jnp.float32,
                   batch_tile=None):
    """x_ncl: (B, Cin, L).  Torch Conv1d weights: w1 (Cout,Cin,K), w2 (Cout,Cout,K),
    wd (Cout,Cin,1) [downsample, since n_inputs != n_outputs].  Returns (B, Cout, L),
    matching the PyTorch TemporalBlock forward in eval mode (raw weights, no weight_norm)."""
    B, Cin, L = x_ncl.shape
    Cout, _, K = w1.shape
    P = (K - 1) * dilation

    # Batch tile: fold TB batches into the lane axis so each matmul sees N = TB*L
    # lanes and the output store is lane-dense (>= 128 lanes when possible).
    if batch_tile is None:
        batch_tile = max(1, min(B, pl.cdiv(128, L)))
    TB = batch_tile
    while B % TB:                   # keep it a divisor of B (no ragged last block)
        TB -= 1
    nb = B // TB
    N = TB * L

    # No host-side pad pass; causal padding lives in the zero-prefixed VMEM scratch.
    x = x_ncl.astype(compute_dtype)
    w1k = jnp.transpose(w1, (2, 0, 1)).astype(compute_dtype)    # (K, Cout, Cin)
    w2k = jnp.transpose(w2, (2, 0, 1)).astype(compute_dtype)    # (K, Cout, Cout)
    wdf = wd[:, :, 0].astype(compute_dtype)                     # (Cout, Cin)
    # Biases stay f32 (added in the f32 epilogue), shaped (Cout, 1) to broadcast on lanes.
    b1r = b1.reshape(Cout, 1).astype(jnp.float32)
    b2r = b2.reshape(Cout, 1).astype(jnp.float32)
    bdr = bd.reshape(Cout, 1).astype(jnp.float32)

    kernel = make_temporal_block_kernel(K, dilation, L, TB, Cin, Cout)

    # TODO(synk): for very long sequences, add an L-tile grid axis (tile a multiple of
    # 128) with a (K-1)*dilation halo and re-derive TB/tile for v7x's 64 MiB VMEM;
    # whole-L blocks are fine at these sizes.
    out_slab = pl.pallas_call(
        kernel,
        out_shape=jax.ShapeDtypeStruct((nb, Cout, N), out_dtype),
        grid_spec=pltpu.PrefetchScalarGridSpec(
            num_scalar_prefetch=0,
            grid=(nb,),
            in_specs=[
                pl.BlockSpec((TB, Cin, L), lambda i: (i, 0, 0)),       # x batch block
                pl.BlockSpec((K, Cout, Cin), lambda i: (0, 0, 0)),     # w1 (resident)
                pl.BlockSpec((Cout, 1), lambda i: (0, 0)),             # b1
                pl.BlockSpec((K, Cout, Cout), lambda i: (0, 0, 0)),    # w2 (resident)
                pl.BlockSpec((Cout, 1), lambda i: (0, 0)),             # b2
                pl.BlockSpec((Cout, Cin), lambda i: (0, 0)),           # wd (resident)
                pl.BlockSpec((Cout, 1), lambda i: (0, 0)),             # bd
            ],
            out_specs=pl.BlockSpec((None, Cout, N), lambda i: (i, 0, 0)),
            scratch_shapes=[
                pltpu.VMEM((Cin, P + N), compute_dtype),    # zero-prefixed x (causal pad)
                pltpu.VMEM((Cout, P + N), compute_dtype),   # zero-prefixed h1
            ],
        ),
        compiler_params=pltpu.CompilerParams(
            dimension_semantics=("parallel",),
            vmem_limit_bytes=64 * 1024 * 1024,
        ),
    )(x, w1k, b1r, w2k, b2r, wdf, bdr)

    # Lane-dense slab (nb, Cout, TB*L) -> PyTorch layout (B, Cout, L).
    # Wrapper-side reshape/transpose is layout plumbing; in-kernel stores stay unmasked.
    out = out_slab.reshape(nb, Cout, TB, L).transpose(0, 2, 1, 3).reshape(B, Cout, L)
    return out


def ref_temporal_block(x, w1, b1, w2, b2, wd, bd, dilation, padding):
    """Pure-JAX reference matching the PyTorch module (eval mode)."""
    def conv1d(inp, w, b, dil, pad):
        y = lax.conv_general_dilated(
            inp, w, window_strides=(1,), padding=[(pad, pad)],
            rhs_dilation=(dil,), dimension_numbers=("NCH", "OIH", "NCH"))
        y = y + b[None, :, None]
        if pad > 0:
            y = y[:, :, :-pad]      # Chomp1d
        return y

    out = jax.nn.relu(conv1d(x, w1, b1, dilation, padding))
    out = jax.nn.relu(conv1d(out, w2, b2, dilation, padding))
    res = conv1d(x, wd, bd, 1, 0)
    return jax.nn.relu(out + res)


if __name__ == "__main__":
    # Module hyper-params: n_inputs=4, n_outputs=8, kernel_size=3, stride=1,
    # dilation=2, padding=(kernel_size-1)*dilation=4, dropout=0.2 (eval -> identity).
    # B=8, L=32 so the batch-folded lane width TB*L = 4*32 = 128 (unmasked stores)
    # and the parallel grid has 2 steps (feeds both v7x TensorCores).
    B, Cin, Cout, L, K, dil = 8, 4, 8, 32, 3, 2
    pad = (K - 1) * dil

    key = jax.random.PRNGKey(0)
    kx, k1, k1b, k2, k2b, kd, kdb = jax.random.split(key, 7)

    x = jax.random.normal(kx, (B, Cin, L), dtype=jnp.float32)
    w1 = jax.random.normal(k1, (Cout, Cin, K), dtype=jnp.float32) * 0.1
    b1 = jax.random.normal(k1b, (Cout,), dtype=jnp.float32) * 0.1
    w2 = jax.random.normal(k2, (Cout, Cout, K), dtype=jnp.float32) * 0.1
    b2 = jax.random.normal(k2b, (Cout,), dtype=jnp.float32) * 0.1
    wd = jax.random.normal(kd, (Cout, Cin, 1), dtype=jnp.float32) * 0.1
    bd = jax.random.normal(kdb, (Cout,), dtype=jnp.float32) * 0.1

    ref = ref_temporal_block(x, w1, b1, w2, b2, wd, bd, dil, pad)

    # f32 path: primary correctness check (tight tolerance).
    out_f32 = temporal_block(x, w1, b1, w2, b2, wd, bd, dil,
                             compute_dtype=jnp.float32)
    out_f32 = jax.block_until_ready(out_f32)
    assert out_f32.shape == (B, Cout, L)
    assert jnp.allclose(out_f32, ref, atol=1e-5, rtol=1e-5), "f32 mismatch vs JAX reference"

    # bf16 DMA/MXU path (f32 accumulation + f32 epilogue): halves HBM traffic on this
    # bandwidth-bound kernel; checked with a loose tolerance (inference-grade).
    out_bf16 = temporal_block(x, w1, b1, w2, b2, wd, bd, dil,
                              compute_dtype=jnp.bfloat16)
    out_bf16 = jax.block_until_ready(out_bf16)
    assert out_bf16.shape == (B, Cout, L)
    assert jnp.allclose(out_bf16, ref, atol=1e-1, rtol=1e-1), "bf16 mismatch vs JAX reference"

    print("KERNEL_OK")
</pallas_src>

<mosaic_0001>
module attributes {stable_mosaic.version = 11 : i64} {
  func.func @kernel(%arg0: i32, %arg1: memref<4x4x32xf32, #tpu.memory_space<vmem>>, %arg2: memref<3x8x4xf32, #tpu.memory_space<vmem>>, %arg3: memref<8x1xf32, #tpu.memory_space<vmem>>, %arg4: memref<3x8x8xf32, #tpu.memory_space<vmem>>, %arg5: memref<8x1xf32, #tpu.memory_space<vmem>>, %arg6: memref<8x4xf32, #tpu.memory_space<vmem>>, %arg7: memref<8x1xf32, #tpu.memory_space<vmem>>, %arg8: memref<1x8x128xf32, #tpu.memory_space<vmem>>, %arg9: memref<4x132xf32, #tpu.memory_space<vmem>>, %arg10: memref<8x132xf32, #tpu.memory_space<vmem>>) attributes {dimension_semantics = [#tpu.dimension_semantics<parallel>], iteration_bounds = array<i64: 2>, scalar_prefetch = 0 : i64, scratch_operands = 2 : i64, tpu.core_type = #tpu.core_type<tc>, window_params = [{transform_indices = @transform_0, window_bounds = array<i64: 4, 4, 32>}, {pipeline_mode = #tpu.pipeline_mode<synchronous>, transform_indices = @transform_1, window_bounds = array<i64: 3, 8, 4>}, {pipeline_mode = #tpu.pipeline_mode<synchronous>, transform_indices = @transform_2, window_bounds = array<i64: 8, 1>}, {pipeline_mode = #tpu.pipeline_mode<synchronous>, transform_indices = @transform_3, window_bounds = array<i64: 3, 8, 8>}, {pipeline_mode = #tpu.pipeline_mode<synchronous>, transform_indices = @transform_4, window_bounds = array<i64: 8, 1>}, {pipeline_mode = #tpu.pipeline_mode<synchronous>, transform_indices = @transform_5, window_bounds = array<i64: 8, 4>}, {pipeline_mode = #tpu.pipeline_mode<synchronous>, transform_indices = @transform_6, window_bounds = array<i64: 8, 1>}, {transform_indices = @transform_7, window_bounds = array<i64: 1, 8, 128>}]} {
    %0 = tpu.iota {dimensions = array<i32: 1>} : vector<1x128xi32>
    %c31_i32 = arith.constant 31 : i32
    %1 = vector.broadcast %c31_i32 : i32 to vector<1x128xi32>
    %2 = arith.andi %0, %1 : vector<1x128xi32>
    %cst = arith.constant 0.000000e+00 : f32
    %3 = vector.broadcast %cst : f32 to vector<4x4xf32>
    %c0 = arith.constant 0 : index
    %c0_0 = arith.constant 0 : index
    %4 = vector.load %arg9[%c0, %c0_0] : memref<4x132xf32, #tpu.memory_space<vmem>>, vector<4x4xf32>
    tpu.vector_store %arg9[%c0, %c0_0], %3 {strides = array<i32>} : memref<4x132xf32, #tpu.memory_space<vmem>>, vector<4x4xf32>,
    %c0_1 = arith.constant 0 : index
    %c0_2 = arith.constant 0 : index
    %c0_3 = arith.constant 0 : index
    %5 = vector.load %arg1[%c0_1, %c0_2, %c0_3] : memref<4x4x32xf32, #tpu.memory_space<vmem>>, vector<1x4x32xf32>
    %6 = vector.shape_cast %5 : vector<1x4x32xf32> to vector<4x32xf32>
    %c0_4 = arith.constant 0 : index
    %c4 = arith.constant 4 : index
    %7 = vector.load %arg9[%c0_4, %c4] : memref<4x132xf32, #tpu.memory_space<vmem>>, vector<4x32xf32>
    tpu.vector_store %arg9[%c0_4, %c4], %6 {strides = array<i32>} : memref<4x132xf32, #tpu.memory_space<vmem>>, vector<4x32xf32>,
    %c1 = arith.constant 1 : index
    %c0_5 = arith.constant 0 : index
    %c0_6 = arith.constant 0 : index
    %8 = vector.load %arg1[%c1, %c0_5, %c0_6] : memref<4x4x32xf32, #tpu.memory_space<vmem>>, vector<1x4x32xf32>
    %9 = vector.shape_cast %8 : vector<1x4x32xf32> to vector<4x32xf32>
    %c0_7 = arith.constant 0 : index
    %c36 = arith.constant 36 : index
    %10 = vector.load %arg9[%c0_7, %c36] : memref<4x132xf32, #tpu.memory_space<vmem>>, vector<4x32xf32>
    tpu.vector_store %arg9[%c0_7, %c36], %9 {strides = array<i32>} : memref<4x132xf32, #tpu.memory_space<vmem>>, vector<4x32xf32>,
    %c2 = arith.constant 2 : index
    %c0_8 = arith.constant 0 : index
    %c0_9 = arith.constant 0 : index
    %11 = vector.load %arg1[%c2, %c0_8, %c0_9] : memref<4x4x32xf32, #tpu.memory_space<vmem>>, vector<1x4x32xf32>
    %12 = vector.shape_cast %11 : vector<1x4x32xf32> to vector<4x32xf32>
    %c0_10 = arith.constant 0 : index
    %c68 = arith.constant 68 : index
    %13 = vector.load %arg9[%c0_10, %c68] : memref<4x132xf32, #tpu.memory_space<vmem>>, vector<4x32xf32>
    tpu.vector_store %arg9[%c0_10, %c68], %12 {strides = array<i32>} : memref<4x132xf32, #tpu.memory_space<vmem>>, vector<4x32xf32>,
    %c3 = arith.constant 3 : index
    %c0_11 = arith.constant 0 : index
    %c0_12 = arith.constant 0 : index
    %14 = vector.load %arg1[%c3, %c0_11, %c0_12] : memref<4x4x32xf32, #tpu.memory_space<vmem>>, vector<1x4x32xf32>
    %15 = vector.shape_cast %14 : vector<1x4x32xf32> to vector<4x32xf32>
    %c0_13 = arith.constant 0 : index
    %c100 = arith.constant 100 : index
    %16 = vector.load %arg9[%c0_13, %c100] : memref<4x132xf32, #tpu.memory_space<vmem>>, vector<4x32xf32>
    tpu.vector_store %arg9[%c0_13, %c100], %15 {strides = array<i32>} : memref<4x132xf32, #tpu.memory_space<vmem>>, vector<4x32xf32>,
    %c0_14 = arith.constant 0 : index
    %c0_15 = arith.constant 0 : index
    %17 = vector.load %arg9[%c0_14, %c0_15] : memref<4x132xf32, #tpu.memory_space<vmem>>, vector<4x128xf32>
    %c0_16 = arith.constant 0 : index
    %c0_17 = arith.constant 0 : index
    %c0_18 = arith.constant 0 : index
    %18 = vector.load %arg2[%c0_16, %c0_17, %c0_18] : memref<3x8x4xf32, #tpu.memory_space<vmem>>, vector<1x8x4xf32>
    %19 = vector.shape_cast %18 : vector<1x8x4xf32> to vector<8x4xf32>
    %cst_19 = arith.constant dense<0.000000e+00> : vector<8x128xf32>
    %20 = tpu.matmul %19, %17, %cst_19 {dimension_numbers = #tpu.dot_dimension_numbers<[1], [0], [0], [1], [0, 0, 1, 1], [], []>} : vector<8x4xf32>, vector<4x128xf32>, vector<8x128xf32> -> vector<8x128xf32>
    %c4_i32 = arith.constant 4 : i32
    %21 = vector.broadcast %c4_i32 : i32 to vector<1x128xi32>
    %22 = arith.cmpi sge, %2, %21 : vector<1x128xi32>
    %cst_20 = arith.constant 0.000000e+00 : f32
    %23 = vector.shape_cast %22 : vector<1x128xi1> to vector<1x128xi1>
    %24 = vector.broadcast %23 : vector<1x128xi1> to vector<8x128xi1>
    %25 = vector.broadcast %cst_20 : f32 to vector<8x128xf32>
    %26 = arith.select %24, %20, %25 : vector<8x128xi1>, vector<8x128xf32>
    %c0_21 = arith.constant 0 : index
    %c2_22 = arith.constant 2 : index
    %27 = vector.load %arg9[%c0_21, %c2_22] : memref<4x132xf32, #tpu.memory_space<vmem>>, vector<4x128xf32>
    %c1_23 = arith.constant 1 : index
    %c0_24 = arith.constant 0 : index
    %c0_25 = arith.constant 0 : index
    %28 = vector.load %arg2[%c1_23, %c0_24, %c0_25] : memref<3x8x4xf32, #tpu.memory_space<vmem>>, vector<1x8x4xf32>
    %29 = vector.shape_cast %28 : vector<1x8x4xf32> to vector<8x4xf32>
    %cst_26 = arith.constant dense<0.000000e+00> : vector<8x128xf32>
    %30 = tpu.matmul %29, %27, %cst_26 {dimension_numbers = #tpu.dot_dimension_numbers<[1], [0], [0], [1], [0, 0, 1, 1], [], []>} : vector<8x4xf32>, vector<4x128xf32>, vector<8x128xf32> -> vector<8x128xf32>
    %c2_i32 = arith.constant 2 : i32
    %31 = vector.broadcast %c2_i32 : i32 to vector<1x128xi32>
    %32 = arith.cmpi sge, %2, %31 : vector<1x128xi32>
    %cst_27 = arith.constant 0.000000e+00 : f32
    %33 = vector.shape_cast %32 : vector<1x128xi1> to vector<1x128xi1>
    %34 = vector.broadcast %33 : vector<1x128xi1> to vector<8x128xi1>
    %35 = vector.broadcast %cst_27 : f32 to vector<8x128xf32>
    %36 = arith.select %34, %30, %35 : vector<8x128xi1>, vector<8x128xf32>
    %37 = arith.addf %26, %36 : vector<8x128xf32>
    %c0_28 = arith.constant 0 : index
    %c4_29 = arith.constant 4 : index
    %38 = vector.load %arg9[%c0_28, %c4_29] : memref<4x132xf32, #tpu.memory_space<vmem>>, vector<4x128xf32>
    %c2_30 = arith.constant 2 : index
    %c0_31 = arith.constant 0 : index
    %c0_32 = arith.constant 0 : index
    %39 = vector.load %arg2[%c2_30, %c0_31, %c0_32] : memref<3x8x4xf32, #tpu.memory_space<vmem>>, vector<1x8x4xf32>
    %40 = vector.shape_cast %39 : vector<1x8x4xf32> to vector<8x4xf32>
    %cst_33 = arith.constant dense<0.000000e+00> : vector<8x128xf32>
    %41 = tpu.matmul %40, %38, %cst_33 {dimension_numbers = #tpu.dot_dimension_numbers<[1], [0], [0], [1], [0, 0, 1, 1], [], []>} : vector<8x4xf32>, vector<4x128xf32>, vector<8x128xf32> -> vector<8x128xf32>
    %42 = arith.addf %37, %41 : vector<8x128xf32>
    %c0_34 = arith.constant 0 : index
    %c0_35 = arith.constant 0 : index
    %43 = vector.load %arg3[%c0_34, %c0_35] : memref<8x1xf32, #tpu.memory_space<vmem>>, vector<8x1xf32>
    %44 = vector.broadcast %43 : vector<8x1xf32> to vector<8x128xf32>
    %45 = arith.addf %42, %44 : vector<8x128xf32>
    %cst_36 = arith.constant 0.000000e+00 : f32
    %46 = vector.broadcast %cst_36 : f32 to vector<8x128xf32>
    %47 = arith.maximumf %45, %46 : vector<8x128xf32>
    %cst_37 = arith.constant 0.000000e+00 : f32
    %48 = vector.broadcast %cst_37 : f32 to vector<8x4xf32>
    %c0_38 = arith.constant 0 : index
    %c0_39 = arith.constant 0 : index
    %49 = vector.load %arg10[%c0_38, %c0_39] : memref<8x132xf32, #tpu.memory_space<vmem>>, vector<8x4xf32>
    tpu.vector_store %arg10[%c0_38, %c0_39], %48 {strides = array<i32>} : memref<8x132xf32, #tpu.memory_space<vmem>>, vector<8x4xf32>,
    %c0_40 = arith.constant 0 : index
    %c4_41 = arith.constant 4 : index
    %50 = vector.load %arg10[%c0_40, %c4_41] : memref<8x132xf32, #tpu.memory_space<vmem>>, vector<8x128xf32>
    tpu.vector_store %arg10[%c0_40, %c4_41], %47 {strides = array<i32>} : memref<8x132xf32, #tpu.memory_space<vmem>>, vector<8x128xf32>,
    %c0_42 = arith.constant 0 : index
    %c0_43 = arith.constant 0 : index
    %51 = vector.load %arg10[%c0_42, %c0_43] : memref<8x132xf32, #tpu.memory_space<vmem>>, vector<8x128xf32>
    %c0_44 = arith.constant 0 : index
    %c0_45 = arith.constant 0 : index
    %c0_46 = arith.constant 0 : index
    %52 = vector.load %arg4[%c0_44, %c0_45, %c0_46] : memref<3x8x8xf32, #tpu.memory_space<vmem>>, vector<1x8x8xf32>
    %53 = vector.shape_cast %52 : vector<1x8x8xf32> to vector<8x8xf32>
    %cst_47 = arith.constant dense<0.000000e+00> : vector<8x128xf32>
    %54 = tpu.matmul %53, %51, %cst_47 {dimension_numbers = #tpu.dot_dimension_numbers<[1], [0], [0], [1], [0, 0, 1, 1], [], []>} : vector<8x8xf32>, vector<8x128xf32>, vector<8x128xf32> -> vector<8x128xf32>
    %c4_i32_48 = arith.constant 4 : i32
    %55 = vector.broadcast %c4_i32_48 : i32 to vector<1x128xi32>
    %56 = arith.cmpi sge, %2, %55 : vector<1x128xi32>
    %cst_49 = arith.constant 0.000000e+00 : f32
    %57 = vector.shape_cast %56 : vector<1x128xi1> to vector<1x128xi1>
    %58 = vector.broadcast %57 : vector<1x128xi1> to vector<8x128xi1>
    %59 = vector.broadcast %cst_49 : f32 to vector<8x128xf32>
    %60 = arith.select %58, %54, %59 : vector<8x128xi1>, vector<8x128xf32>
    %c0_50 = arith.constant 0 : index
    %c2_51 = arith.constant 2 : index
    %61 = vector.load %arg10[%c0_50, %c2_51] : memref<8x132xf32, #tpu.memory_space<vmem>>, vector<8x128xf32>
    %c1_52 = arith.constant 1 : index
    %c0_53 = arith.constant 0 : index
    %c0_54 = arith.constant 0 : index
    %62 = vector.load %arg4[%c1_52, %c0_53, %c0_54] : memref<3x8x8xf32, #tpu.memory_space<vmem>>, vector<1x8x8xf32>
    %63 = vector.shape_cast %62 : vector<1x8x8xf32> to vector<8x8xf32>
    %cst_55 = arith.constant dense<0.000000e+00> : vector<8x128xf32>
    %64 = tpu.matmul %63, %61, %cst_55 {dimension_numbers = #tpu.dot_dimension_numbers<[1], [0], [0], [1], [0, 0, 1, 1], [], []>} : vector<8x8xf32>, vector<8x128xf32>, vector<8x128xf32> -> vector<8x128xf32>
    %c2_i32_56 = arith.constant 2 : i32
    %65 = vector.broadcast %c2_i32_56 : i32 to vector<1x128xi32>
    %66 = arith.cmpi sge, %2, %65 : vector<1x128xi32>
    %cst_57 = arith.constant 0.000000e+00 : f32
    %67 = vector.shape_cast %66 : vector<1x128xi1> to vector<1x128xi1>
    %68 = vector.broadcast %67 : vector<1x128xi1> to vector<8x128xi1>
    %69 = vector.broadcast %cst_57 : f32 to vector<8x128xf32>
    %70 = arith.select %68, %64, %69 : vector<8x128xi1>, vector<8x128xf32>
    %71 = arith.addf %60, %70 : vector<8x128xf32>
    %c0_58 = arith.constant 0 : index
    %c4_59 = arith.constant 4 : index
    %72 = vector.load %arg10[%c0_58, %c4_59] : memref<8x132xf32, #tpu.memory_space<vmem>>, vector<8x128xf32>
    %c2_60 = arith.constant 2 : index
    %c0_61 = arith.constant 0 : index
    %c0_62 = arith.constant 0 : index
    %73 = vector.load %arg4[%c2_60, %c0_61, %c0_62] : memref<3x8x8xf32, #tpu.memory_space<vmem>>, vector<1x8x8xf32>
    %74 = vector.shape_cast %73 : vector<1x8x8xf32> to vector<8x8xf32>
    %cst_63 = arith.constant dense<0.000000e+00> : vector<8x128xf32>
    %75 = tpu.matmul %74, %72, %cst_63 {dimension_numbers = #tpu.dot_dimension_numbers<[1], [0], [0], [1], [0, 0, 1, 1], [], []>} : vector<8x8xf32>, vector<8x128xf32>, vector<8x128xf32> -> vector<8x128xf32>
    %76 = arith.addf %71, %75 : vector<8x128xf32>
    %c0_64 = arith.constant 0 : index
    %c0_65 = arith.constant 0 : index
    %77 = vector.load %arg5[%c0_64, %c0_65] : memref<8x1xf32, #tpu.memory_space<vmem>>, vector<8x1xf32>
    %78 = vector.broadcast %77 : vector<8x1xf32> to vector<8x128xf32>
    %79 = arith.addf %76, %78 : vector<8x128xf32>
    %cst_66 = arith.constant 0.000000e+00 : f32
    %80 = vector.broadcast %cst_66 : f32 to vector<8x128xf32>
    %81 = arith.maximumf %79, %80 : vector<8x128xf32>
    %c0_67 = arith.constant 0 : index
    %c0_68 = arith.constant 0 : index
    %82 = vector.load %arg6[%c0_67, %c0_68] : memref<8x4xf32, #tpu.memory_space<vmem>>, vector<8x4xf32>
    %c0_69 = arith.constant 0 : index
    %c4_70 = arith.constant 4 : index
    %83 = vector.load %arg9[%c0_69, %c4_70] : memref<4x132xf32, #tpu.memory_space<vmem>>, vector<4x128xf32>
    %cst_71 = arith.constant dense<0.000000e+00> : vector<8x128xf32>
    %84 = tpu.matmul %82, %83, %cst_71 {dimension_numbers = #tpu.dot_dimension_numbers<[1], [0], [0], [1], [0, 0, 1, 1], [], []>} : vector<8x4xf32>, vector<4x128xf32>, vector<8x128xf32> -> vector<8x128xf32>
    %85 = arith.addf %81, %84 : vector<8x128xf32>
    %c0_72 = arith.constant 0 : index
    %c0_73 = arith.constant 0 : index
    %86 = vector.load %arg7[%c0_72, %c0_73] : memref<8x1xf32, #tpu.memory_space<vmem>>, vector<8x1xf32>
    %87 = vector.broadcast %86 : vector<8x1xf32> to vector<8x128xf32>
    %88 = arith.addf %85, %87 : vector<8x128xf32>
    %cst_74 = arith.constant 0.000000e+00 : f32
    %89 = vector.broadcast %cst_74 : f32 to vector<8x128xf32>
    %90 = arith.maximumf %88, %89 : vector<8x128xf32>
    %c0_75 = arith.constant 0 : index
    %c0_76 = arith.constant 0 : index
    %c0_77 = arith.constant 0 : index
    %91 = vector.load %arg8[%c0_75, %c0_76, %c0_77] : memref<1x8x128xf32, #tpu.memory_space<vmem>>, vector<1x8x128xf32>
    %92 = vector.shape_cast %91 : vector<1x8x128xf32> to vector<8x128xf32>
    %93 = vector.shape_cast %90 : vector<8x128xf32> to vector<1x8x128xf32>
    tpu.vector_store %arg8[%c0_75, %c0_76, %c0_77], %93 {strides = array<i32>} : memref<1x8x128xf32, #tpu.memory_space<vmem>>, vector<1x8x128xf32>,
    return
  }
  func.func @transform_0(%arg0: i32) -> (i32, i32, i32) {
    %c0_i32 = arith.constant 0 : i32
    %c0_i32_0 = arith.constant 0 : i32
    %c0_i32_1 = arith.constant 0 : i32
    return %arg0, %c0_i32, %c0_i32_0 : i32, i32, i32
  }
  func.func @transform_1(%arg0: i32) -> (i32, i32, i32) {
    %c0_i32 = arith.constant 0 : i32
    %c0_i32_0 = arith.constant 0 : i32
    %c0_i32_1 = arith.constant 0 : i32
    %c0_i32_2 = arith.constant 0 : i32
    return %c0_i32, %c0_i32_0, %c0_i32_1 : i32, i32, i32
  }
  func.func @transform_2(%arg0: i32) -> (i32, i32) {
    %c0_i32 = arith.constant 0 : i32
    %c0_i32_0 = arith.constant 0 : i32
    %c0_i32_1 = arith.constant 0 : i32
    return %c0_i32, %c0_i32_0 : i32, i32
  }
  func.func @transform_3(%arg0: i32) -> (i32, i32, i32) {
    %c0_i32 = arith.constant 0 : i32
    %c0_i32_0 = arith.constant 0 : i32
    %c0_i32_1 = arith.constant 0 : i32
    %c0_i32_2 = arith.constant 0 : i32
    return %c0_i32, %c0_i32_0, %c0_i32_1 : i32, i32, i32
  }
  func.func @transform_4(%arg0: i32) -> (i32, i32) {
    %c0_i32 = arith.constant 0 : i32
    %c0_i32_0 = arith.constant 0 : i32
    %c0_i32_1 = arith.constant 0 : i32
    return %c0_i32, %c0_i32_0 : i32, i32
  }
  func.func @transform_5(%arg0: i32) -> (i32, i32) {
    %c0_i32 = arith.constant 0 : i32
    %c0_i32_0 = arith.constant 0 : i32
    %c0_i32_1 = arith.constant 0 : i32
    return %c0_i32, %c0_i32_0 : i32, i32
  }
  func.func @transform_6(%arg0: i32) -> (i32, i32) {
    %c0_i32 = arith.constant 0 : i32
    %c0_i32_0 = arith.constant 0 : i32
    %c0_i32_1 = arith.constant 0 : i32
    return %c0_i32, %c0_i32_0 : i32, i32
  }
  func.func @transform_7(%arg0: i32) -> (i32, i32, i32) {
    %c0_i32 = arith.constant 0 : i32
    %c0_i32_0 = arith.constant 0 : i32
    %c0_i32_1 = arith.constant 0 : i32
    return %arg0, %c0_i32, %c0_i32_0 : i32, i32, i32
  }
}

</mosaic_0001>

<bundles_post_ra>
// kernel: tpu_custom_call.1
= control target key start
LH: loop header
LB: loop body
LE: loop exit
PB: predicated region body
PF: predicated region fallthrough
CT: control target
= control target key end

     0   :  { %12 = vsyncpa [#allocation5], 0  ;;  %s1457_s0 = inlined_call_operand.vmem [shape: f32[8,4,32], index: 0, kind: input, shape index: {}]   ;;  %s1458_s1 = inlined_call_operand.vmem [shape: f32[3,8,4], index: 1, kind: input, shape index: {}]   ;;  %s1459_s2 = inlined_call_operand.vmem [shape: f32[8,1], index: 2, kind: input, shape index: {}]   ;;  %s1460_s3 = inlined_call_operand.vmem [shape: f32[3,8,8], index: 3, kind: input, shape index: {}]   ;;  %s1461_s4 = inlined_call_operand.vmem [shape: f32[8,1], index: 4, kind: input, shape index: {}]   ;;  %s1462_s5 = inlined_call_operand.vmem [shape: f32[8,4], index: 5, kind: input, shape index: {}]   ;;  %s1463_s6 = inlined_call_operand.vmem [shape: f32[8,1], index: 6, kind: input, shape index: {}]   ;;  %s1464_s7 = inlined_call_operand.hbm [shape: f32[2,8,128], index: 7, kind: output, shape index: {}]  }
   0x1   :  { %14 = vsyncpa [#allocation5 + $0x1], 0  ;;  %s1260_s24 = smov 0   ;;  %s1262_s25 = smov 0  }
   0x2   :  { %s1264_s26 = smov 0   ;;  %s1266_s27 = smov 0  }
   0x3 LB: > { %s1281_s28 = sadd.s32 4294967295, %s1208_s27   ;;  %s1019_s29 = sadd.s32 4294967294, %s1208_s27   ;;  %s1208_s27 = sphi %s1266_s27, %s1474_s27   ;;  %s1204_s26 = sphi %s1264_s26, %s1473_s26   ;;  %s1200_s25 = sphi %s1262_s25, %s1472_s25   ;;  %s1196_s24 = sphi %s1260_s24, %s1471_s24  }
   0x4   : > { %s1285_s30 = sadd.s32 1, %s1208_s27   ;;  %s179_s8 = sadd.s32 1, %s1204_s26 }
   0x5   : > { %s176_s9 = ssub.s32 %s1208_s27, %s1285_s30  ;;  %p189_p0 = scmp.ne.s32.totalorder %s1204_s26, %s1200_s25 }
   0x6   : > { %p177_p1 = scmp.eq.s32.totalorder %s176_s9, 0  ;;  %p190_p2 = scmp.eq.s32.totalorder %s1281_s28, 1 }
   0x7   : > { %p195_p3 = scmp.ne.s32.totalorder %s1200_s25, %s1196_s24  ;;  %p196_p4 = scmp.eq.s32.totalorder %s1019_s29, 1 }
   0x8   : > { %s1296_s10 = scalar_select %p177_p1, %s1204_s26, %s179_s8  }
   0x9   : > { %p1298_p5 = por %p190_p2, %p189_p0  ;;  %p1302_p6 = por %p196_p4, %p195_p3 }
   0xa   : > { %p1022_p7 = scmp.ge.s32.totalorder %s1208_s27, 1  ;;  %p241_p8 = scmp.lt.s32.totalorder %s1208_s27, 3 }
   0xc   : > { %p242_p9 = pnand %p1022_p7, %p241_p8 }
   0xd   : > { %s1024_s13 = sshll.u32 (!%p242_p9), %s1281_s28, 2  ;;  %s1211_s18 = smov (!%p242_p9), 4  }
   0xe   : > { %245 = sbr.rel (%p242_p9) target bundleno = 939 (0x3ab), region = 48  ;;  %p274_p10 = scmp.lt.s32.totalorder (!%p242_p9), %s1024_s13, 7 }
   0xf   : > { %s1212_s19 = smov (!%p242_p9), 36   ;;  %s1213_s20 = smov (!%p242_p9), 100  }
  0x10   : > { %s1214_s21 = smov (!%p242_p9), 68   ;;  %s1217_s29 = smov (!%p242_p9), 126  }
  0x11   : > { %s1218_s8 = smov (!%p242_p9), 124   ;;  %s270_s16 = sand.u32 (!%p242_p9), 1, %s1200_s25  }
  0x13   : > { %vm282_vm0 = vcmask 27648   ;;  %v1210_v0 = vmov 0.0   ;;  %s1476_s13 = smov (!%p274_p10, %s1024_s13), 7  ;;  %vm289_vm1 = vcmask 289824   ;;  %vm297_vm2 = vcmask 552224   ;;  %v321_v12 = vld [vmem:[%s1458_s1] sm:$0xff] }
  0x14   : > { %283 = vst.msk [vmem:[#allocation2] sm:$0xf] %vm282_vm0, %v1210_v0  ;;  %1062 = vmatprep.subr.mxu0 %v1210_v0  ;;  %1067 = vmatprep.subr.mxu1 %v1210_v0  ;;  %s1025_s14 = sshll.u32 %s1476_s13, 2  ;;  %vm305_vm3 = vcmask 814624   ;;  %vm316_vm4 = vcmask 1044256   ;;  %vm317_vm5 = vcmask 31748   ;;  %v279_v27 = vlaneseq }
  0x15   : > { %s277_s17 = scalar_lea.vmem %s1457_s0, %s1025_s14  ;;  %vm1215_vm6 = vmmov 0   ;;  %vm313_vm7 = vcmask 818176   ;;  %vm322_vm8 = vcmask 31744   ;;  %vm318_vm9 = vmor %vm317_vm5, %vm316_vm4  ;;  %v1216_v11 = vmov 0   ;;  %v582_v16 = vld [vmem:[%s1459_s2] sm:$0xff]  ;;  %v1031_v19 = vld [vmem:[%s1458_s1 + $0x8] sm:$0xff] }
  0x16   : > { %v284_v1 = vld [vmem:[%s277_s17] sm:$0xf]  ;;  %v1026_v2 = vld [vmem:[%s277_s17 + $0x4] sm:$0xf]  ;;  %v1028_v3 = vld [vmem:[%s277_s17 + $0xc] sm:$0xf]  ;;  %1064 = vmatprep.mubr.msk.f32.mxu0 %vm1215_vm6, %v1210_v0  ;;  %1069 = vmatprep.mubr.msk.f32.mxu1 %vm1215_vm6, %v1210_v0 }
  0x17   : > { %286 = vrot.lane.b32.xlu0 %v284_v1, %s1211_s18  ;;  %294 = vrot.lane.b32.xlu1 %v1026_v2, %s1212_s19  ;;  %v1027_v4 = vld [vmem:[%s277_s17 + $0x8] sm:$0xf]  ;;  %590 = vst.msk [vmem:[#allocation3] sm:$0xff] %vm322_vm8, %v1210_v0  ;;  %vm326_vm10 = vcmask 1043456   ;;  %vm413_vm11 = vcmask 1031168   ;;  %vm504_vm12 = vcmask 1014784  }
  0x18   : > { %1145 = vset.pattern.permute.xlu0 %v1216_v11  ;;  %1146 = vset.pattern.permute.xlu1 %v1216_v11  ;;  %v1034_v23 = vld [vmem:[%s1458_s1 + $0x10] sm:$0xff]  ;;  %v280_v28 = vand.u32 127, %v279_v27  ;;  %vm595_vm15 = vcmask 1047584   ;;  %v599_v46 = vld [vmem:[%s1460_s3] sm:$0xff]  ;;  %vm600_vm0 = vcmask 64512   ;;  %v1038_v51 = vld [vmem:[%s1460_s3 + $0x8] sm:$0xff] }
  0x19   : > { %v937_v47 = vld [vmem:[%s1463_s6] sm:$0xff]  ;;  %v1040_v55 = vld [vmem:[%s1460_s3 + $0x10] sm:$0xff]  ;;  %s1023_s17 = sshll.u32 %s270_s16, 3  ;;  %s1045_s19 = sshll.u32 %s1281_s28, 7 }
  0x1a   : > { %v281_v29 = vand.u32 31, %v280_v28  ;;  %v844_v48 = vld [vmem:[%s1461_s4] sm:$0xff]  ;;  %s958_s23 = scalar_lea.hbm %s1464_s7, %s1045_s19 }
  0x1b   : > { %310 = vrot.lane.b32.xlu0 %v1028_v3, %s1213_s20  ;;  %302 = vrot.lane.b32.xlu1 %v1027_v4, %s1214_s21  ;;  %v852_v59 = vld [vmem:[%s1462_s5] sm:$0xff]  ;;  %s272_s20 = scalar_lea.vmem [#allocation4], %s1023_s17 }
  0x1c   : > { %vm1365_vm13 = vcmp.ge.s32.totalorder %v281_v29, 4  ;;  %vm1369_vm14 = vcmp.ge.s32.totalorder %v281_v29, 2 }
  0x89   : > { %v287_v5 = vpop.permute.xlu0 %286  ;;  %v295_v6 = vpop.permute.xlu1 %294 }
  0x8a   : > { %290 = vst.msk [vmem:[#allocation2] sm:$0xf] %vm289_vm1, %v287_v5 }
  0x8b   : > { %298 = vst.msk [vmem:[#allocation2] sm:$0xf] %vm297_vm2, %v295_v6 }
  0x8d   : > { %v311_v7 = vpop.permute.xlu0 %310  ;;  %v303_v8 = vpop.permute.xlu1 %302 }
  0x8e   : > { %v312_v9 = vrot.slane %v311_v7, 4  ;;  %306 = vst.msk [vmem:[#allocation2] sm:$0xf] %vm305_vm3, %v303_v8 }
  0x90   : > { %v314_v10 = vsel %vm313_vm7, %v312_v9, %v311_v7 }
  0x91   : > { %319 = vst.msk [vmem:[#allocation2] sm:$0xff] %vm318_vm9, %v314_v10 }
  0x98   : > { %v1325_v13 = vld [vmem:[#allocation2] sm:$0xff] }
  0x99   : > { %v320_v14 = vld [vmem:[#allocation2] sm:$0xf]  ;;  %409 = vrot.lane.b32.xlu0 %v1325_v13, %s1217_s29  ;;  %v1331_v15 = vcombine.high %v1325_v13, %v1325_v13 }
  0x9a   : > { %1063 = vmatpush3.msk.msra.mxu0 %vm326_vm10, %v320_v14 }
  0x9b   : > { %1065 = vmatmul.mubr.msk.f32.vlgmr.msra.gmra.mxu0 %vm322_vm8, %v321_v12  ;;  %1072 = vmatprep.subr.mxu0 %v1210_v0 }
  0x9c   : > { %411 = vrot.lane.b32.xlu1 %v1331_v15, %s1217_s29  ;;  %1074 = vmatprep.mubr.msk.f32.mxu0 %vm1215_vm6, %v1210_v0 }
  0x9d   : > { %500 = vrot.lane.b32.xlu0 %v1325_v13, %s1218_s8 }
  0xa0   : > { %502 = vrot.lane.b32.xlu1 %v1331_v15, %s1218_s8 }
  0xa1   : > { %585 = vperm.xlu0 %1145, %v582_v16  }
 0x10b   : > { %v410_v17 = vpop.permute.xlu0 %409 }
 0x10e   : > { %v412_v18 = vpop.permute.xlu1 %411 }
 0x10f   : > { %v414_v20 = vsel %vm413_vm11, %v410_v17, %v412_v18  ;;  %v501_v21 = vpop.permute.xlu0 %500 }
 0x110   : > { %1068 = vmatpush3.msk.msra.mxu1 %vm326_vm10, %v414_v20 }
 0x111   : > { %1070 = vmatmul.mubr.msk.f32.vlgmr.msra.gmra.mxu1 %vm322_vm8, %v1031_v19  ;;  %1077 = vmatprep.subr.mxu1 %v1210_v0 }
 0x112   : > { %v503_v22 = vpop.permute.xlu1 %502  ;;  %1079 = vmatprep.mubr.msk.f32.mxu1 %vm1215_vm6, %v1210_v0 }
 0x113   : > { %v505_v24 = vsel %vm504_vm12, %v501_v21, %v503_v22 }
 0x114   : > { %1073 = vmatpush3.msk.msra.mxu0 %vm326_vm10, %v505_v24 }
 0x115   : > { %1075 = vmatmul.mubr.msk.f32.vlgmr.msra.gmra.mxu0 %vm322_vm8, %v1034_v23  ;;  %1082 = vmatprep.subr.mxu0 %v1210_v0 }
 0x116   : > { %1084 = vmatprep.mubr.msk.f32.mxu0 %vm1215_vm6, %v1210_v0 }
 0x11c   : > { %v586_v38 = vpop.permute.xlu0 %585 }
 0x15b   : > { %v396_v25 = vpop.f32.mrf.mxu0 }
 0x15c   : > { %v403_v32 = vsel %vm1365_vm13, %v396_v25, 0.0 }
 0x15d   : > { %v1066_v26 = vpop.f32.mrf.mxu0 }
 0x1d1   : > { %v486_v33 = vpop.f32.mrf.mxu1 }
 0x1d2   : > { %v493_v34 = vsel %vm1369_vm14, %v486_v33, 0.0 }
 0x1d3   : > { %v494_v35 = vadd.f32 %v493_v34, %v403_v32  ;;  %v1071_v36 = vpop.f32.mrf.mxu1 }
 0x1d5   : > { %v577_v37 = vpop.f32.mrf.mxu0 }
 0x1d6   : > { %v581_v39 = vadd.f32 %v577_v37, %v494_v35 }
 0x1d7   : > { %v1076_v40 = vpop.f32.mrf.mxu0 }
 0x1d8   : > { %v588_v41 = vadd.f32 %v586_v38, %v581_v39 }
 0x1da   : > { %v589_v42 = vmax.f32 %v588_v41, 0.0 }
 0x1dc   : > { %592 = vrot.lane.b32.xlu1 %v589_v42, %s1211_s18  ;;  %s960_s18 = sshll.u32 %s272_s20, 4  ;;  %s961_s18 = int_to_ptr.vmem [resolvable:$true] %s960_s18 }
 0x1dd   : > { %s1148_s9 = scalar_lea.vmem %s961_s18, 128 }
 0x1de   : > { %p1149_p11 = scmp.ne.s32.totalorder %s961_s18, %s1148_s9 }
 0x1e0   : > { %p1150_p12 = pnand %p1149_p11, %p1298_p5 }
 0x1e2   : > { %p1151_p13 = pneg %p1150_p12 }
 0x24e   : > { %v593_v43 = vpop.permute.xlu1 %592 }
 0x24f   : > { %596 = vst.msk [vmem:[#allocation3] sm:$0xff] %vm595_vm15, %v593_v43 }
 0x250   : > { %597 = vst.msk [vmem:[#allocation3 + $0x8] sm:$0xff] %vm322_vm8, %v593_v43 }
 0x256   : > { %v675_v45 = vld [vmem:[#allocation3] sm:$0xff] }
 0x257   : > { %v676_v44 = vld [vmem:[#allocation3 + $0x8] sm:$0xff]  ;;  %681 = vrot.lane.b32.xlu1 %v675_v45, %s1217_s29  ;;  %1078 = vmatpush3.msra.mxu1 %v675_v45 }
 0x258   : > { %683 = vrot.lane.b32.xlu0 %v676_v44, %s1217_s29  ;;  %1080 = vmatmul.mubr.msk.f32.vlgmr.msra.gmra.mxu1 %vm600_vm0, %v599_v46  ;;  %s947_s29 = scalar_lea.sflag [#allocation5], %s270_s16 }
 0x259   : > { %1087 = vmatprep.subr.mxu1 %v1210_v0  ;;  %1089 = vmatprep.mubr.msk.f32.mxu1 %vm1215_vm6, %v1210_v0 }
 0x25b   : > { %764 = vrot.lane.b32.xlu1 %v675_v45, %s1218_s8 }
 0x25c   : > { %766 = vrot.lane.b32.xlu0 %v676_v44, %s1218_s8 }
 0x25f   : > { %856 = vrot.lane.b32.xlu1 %v1325_v13, %s1218_s8 }
 0x260   : > { %858 = vrot.lane.b32.xlu0 %v1331_v15, %s1218_s8  ;;  %s1219_s8 = smov [#allocation4]  }
 0x261   : > { %s1152_s13 = sshll.u32 %s1219_s8, 4  ;;  %s1153_s13 = int_to_ptr.vmem [resolvable:$false] %s1152_s13 }
 0x262   : > { %s1154_s28 = scalar_lea.vmem %s1153_s13, 256  ;;  %p1155_p0 = scmp.lt.s32.totalorder %s961_s18, %s1153_s13 }
 0x263   : > { %847 = vperm.xlu1 %1146, %v844_v48   ;;  %p1156_p1 = scmp.lt.s32.totalorder %s1154_s28, %s1148_s9 }
 0x264   : > { %940 = vperm.xlu0 %1145, %v937_v47  }
 0x265   : > { %p1157_p2 = por %p1156_p1, %p1155_p0 }
 0x267   : > { %p1158_p3 = pnand %p1157_p2, %p1151_p13 }
 0x2c9   : > { %v682_v50 = vpop.permute.xlu1 %681 }
 0x2ca   : > { %v684_v49 = vpop.permute.xlu0 %683 }
 0x2cb   : > { %v685_v52 = vsel %vm413_vm11, %v682_v50, %v684_v49 }
 0x2cc   : > { %1083 = vmatpush3.msra.mxu0 %v685_v52 }
 0x2cd   : > { %1085 = vmatmul.mubr.msk.f32.vlgmr.msra.gmra.mxu0 %vm600_vm0, %v1038_v51  ;;  %1092 = vmatprep.subr.mxu0 %v1210_v0  ;;  %v765_v54 = vpop.permute.xlu1 %764 }
 0x2ce   : > { %v767_v53 = vpop.permute.xlu0 %766  ;;  %1094 = vmatprep.mubr.msk.f32.mxu0 %vm1215_vm6, %v1210_v0 }
 0x2cf   : > { %v768_v56 = vsel %vm504_vm12, %v765_v54, %v767_v53 }
 0x2d0   : > { %1088 = vmatpush3.msra.mxu1 %v768_v56 }
 0x2d1   : > { %1090 = vmatmul.mubr.msk.f32.vlgmr.msra.gmra.mxu1 %vm600_vm0, %v1040_v55  ;;  %v857_v58 = vpop.permute.xlu1 %856 }
 0x2d2   : > { %v859_v57 = vpop.permute.xlu0 %858 }
 0x2d3   : > { %v860_v60 = vsel %vm504_vm12, %v857_v58, %v859_v57 }
 0x2d4   : > { %1093 = vmatpush3.msk.msra.mxu0 %vm326_vm10, %v860_v60 }
 0x2d5   : > { %1095 = vmatmul.mubr.msk.f32.vlgmr.msra.gmra.mxu0 %vm322_vm8, %v852_v59 }
 0x2de   : > { %v848_v5 = vpop.permute.xlu1 %847 }
 0x2df   : > { %v941_v13 = vpop.permute.xlu0 %940 }
 0x318   : > { %v670_v61 = vpop.f32.mrf.mxu1 }
 0x319   : > { %v674_v63 = vsel %vm1365_vm13, %v670_v61, 0.0 }
 0x31a   : > { %v1081_v62 = vpop.f32.mrf.mxu1 }
 0x38d   : > { %v756_v0 = vpop.f32.mrf.mxu0 }
 0x38e   : > { %v760_v1 = vsel %vm1369_vm14, %v756_v0, 0.0 }
 0x38f   : > { %v761_v2 = vadd.f32 %v760_v1, %v674_v63  ;;  %v1086_v3 = vpop.f32.mrf.mxu0 }
 0x391   : > { %v839_v4 = vpop.f32.mrf.mxu1 }
 0x392   : > { %v843_v6 = vadd.f32 %v839_v4, %v761_v2 }
 0x393   : > { %v1091_v7 = vpop.f32.mrf.mxu1 }
 0x394   : > { %v850_v8 = vadd.f32 %v848_v5, %v843_v6 }
 0x395   : > { %v932_v9 = vpop.f32.mrf.mxu0 }
 0x396   : > { %v851_v10 = vmax.f32 %v850_v8, 0.0 }
 0x397   : > { %v1096_v11 = vpop.f32.mrf.mxu0 }
 0x398   : > { %v936_v12 = vadd.f32 %v932_v9, %v851_v10 }
 0x39a   : > { %v943_v14 = vadd.f32 %v941_v13, %v936_v12 }
 0x39c   : > { %v944_v15 = vmax.f32 %v943_v14, 0.0 }
 0x39e   : > { %945 = vst [vmem:[%s272_s20] sm:$0xff] %v944_v15 }
 0x39f   : > { %1161 = shalt.err (!%p1158_p3)
}
 0x3a0   : > { %s1162_s14 = scalar_lea.hbm %s958_s23, 128  ;;  %s1166_s17 = scalar_lea.hbm %s1464_s7, 256 }
 0x3a1   : > { %p1163_p4 = scmp.ne.s32.totalorder %s958_s23, %s1162_s14  ;;  %p1167_p9 = scmp.lt.s32.totalorder %s958_s23, %s1464_s7 }
 0x3a2   : > { %p1168_p10 = scmp.lt.s32.totalorder %s1166_s17, %s1162_s14 }
 0x3a3   : > { %p1164_p7 = pnand %p1163_p4, %p1298_p5 }
 0x3a4   : > { %p1169_p11 = por %p1168_p10, %p1167_p9 }
 0x3a5   : > { %p1165_p8 = pneg %p1164_p7 }
 0x3a7   : > { %p1170_p12 = pnand %p1169_p11, %p1165_p8 }
 0x3a9   : > { %1173 = shalt.err (!%p1170_p12)
}
 0x3aa   : > { %1097 = dma.vmem_to_hbm [thread:$0]  (%p1298_p5), %s961_s18, 128, %s958_s23, %s947_s29  }
 0x3ab PF: > { %p1103_p13 = scmp.ge.s32.totalorder %s1208_s27, 2  ;;  %s972_s21 = sand.u32 1, %s1196_s24  }
 0x3ac   : > { %s973_s22 = scalar_lea.sflag [#allocation5], %s972_s21 }
 0x3ad   : > { %p1100_p0 = pnand %p1103_p13, %p1302_p6 }
 0x3af   : > { %p1101_p1 = pneg %p1100_p0 }
 0x3b1   : > { %1191 = dma.done.wait (%p1101_p1), %s973_s22, 128  }
 0x3b2   : > { %1193 = vsyncadd (%p1101_p1), %s973_s22, 4294967168  ;;  %p17_p2 = scmp.ge.s32.totalorder %s1285_s30, 4   ;;  %s1471_s24 = smov %s1200_s25 }
 0x3b3   : > { %s1472_s25 = smov %s1204_s26  ;;  %s1473_s26 = smov %s1296_s10 }
 0x3b4   : > { %s1474_s27 = smov %s1285_s30  ;;  %19 = sbr.rel (!%p17_p2) target bundleno = 3 (0x3), region = 90 }
 0x3b9   :  { %978 = vsyncpa [#allocation5], 1 }
 0x3ba   :  { %980 = vsyncpa [#allocation5 + $0x1], 1 }

</bundles_post_ra>
